<compile_context>
chip_gen: v6e
topology: v6e:2x2x1
jax: 0.10.0
libtpu: 0.0.40
codegen_flags: <defaults>
</compile_context>

<pallas_src>
import jax
import jax.numpy as jnp
from jax.experimental import pallas as pl
from jax.experimental.pallas import tpu as pltpu


def critic_kernel(logp_ref, loc_ref, params_ref, out_ref):
    # logp_ref  : (B, S, L)   f32, VMEM
    # loc_ref   : (B, E, L)   f32, VMEM  (original PyTorch layout, no wrapper permute)
    # params_ref: (E+3, H)    f32, VMEM  rows [0:E]=W1^T, [E]=b1, [E+1]=w2, [E+2]=b2 (bcast)
    # out_ref   : (B, S)      f32, VMEM
    B, S, _ = logp_ref.shape
    E = loc_ref.shape[1]
    H = params_ref.shape[1]

    logp = logp_ref[...]
    loc = loc_ref[...]

    # softmax over last axis; exact reciprocal (approx vrcp could break 1e-5 allclose)
    m = jnp.max(logp, axis=-1, keepdims=True)
    e = jnp.exp(logp - m)
    s = jnp.sum(e, axis=-1, keepdims=True)
    p = e * pl.reciprocal(s, approx=False)                          # (B, S, L)

    # bmm(p, loc^T): contract the shared last dim L; the PyTorch permute(0,2,1)
    # is absorbed by the contraction (any needed transpose of the tiny (E,L)
    # tile is XLU work hidden under the input DMAs).
    ws = jnp.einsum('bsl,bel->bse', p, loc,
                    preferred_element_type=jnp.float32)             # (B, S, E)

    # Merge leading dims (E stays on lanes -> free relayout): one MXU matmul.
    ws2 = ws.reshape(B * S, E)                                      # (B*S, E)

    w1t = params_ref[0:E, :]                                        # (E, H)
    b1 = params_ref[E:E + 1, :]                                     # (1, H)
    w2 = params_ref[E + 1:E + 2, :]                                 # (1, H)
    b2 = params_ref[E + 2:E + 3, 0:1]                               # (1, 1)

    h = jnp.dot(ws2, w1t, preferred_element_type=jnp.float32) + b1  # (B*S, H)
    h = jnp.maximum(h, 0.0)                                         # relu

    # Linear(H -> 1) as VPU multiply + lane reduction; splitting the leading
    # dim (B*S -> B, S) keeps the (8,128) tiling, so the reshape is free.
    hw = (h * w2).reshape(B, S, H)                                  # (B, S, H)
    out_ref[...] = jnp.sum(hw, axis=-1) + b2                        # (B, S)


def make_critic_forward(w1, b1, w2, b2):
    """Packs the weights once (outside the per-call path) and returns a jitted
    forward(log_probabilities, location_embedding) -> (B, S)."""
    H, E = w1.shape

    # One-time packing (setup cost, not on the per-call path):
    params = jnp.concatenate(
        [jnp.asarray(w1, jnp.float32).T,                            # (E, H)
         jnp.asarray(b1, jnp.float32).reshape(1, H),                # (1, H)
         jnp.asarray(w2, jnp.float32).reshape(1, H),                # (1, H)
         jnp.broadcast_to(jnp.asarray(b2, jnp.float32).reshape(1, 1),
                          (1, H))],                                 # (1, H) b2 bcast
        axis=0)                                                     # (E+3, H)

    @jax.jit
    def forward(log_probabilities, location_embedding):
        B, S, _ = log_probabilities.shape
        return pl.pallas_call(
            critic_kernel,
            out_shape=jax.ShapeDtypeStruct((B, S), jnp.float32),
            in_specs=[
                pl.BlockSpec(memory_space=pltpu.MemorySpace.VMEM),  # logp (B,S,L)
                pl.BlockSpec(memory_space=pltpu.MemorySpace.VMEM),  # loc  (B,E,L)
                pl.BlockSpec(memory_space=pltpu.MemorySpace.VMEM),  # packed params
            ],
            out_specs=pl.BlockSpec(memory_space=pltpu.MemorySpace.VMEM),
        )(log_probabilities.astype(jnp.float32),
          location_embedding.astype(jnp.float32),
          params)

    return forward


def reference_forward(logp, loc, w1, b1, w2, b2):
    p = jax.nn.softmax(logp, axis=-1)
    loc_t = jnp.transpose(loc, (0, 2, 1))                           # (B, L, E)
    ws = jnp.einsum('bsl,ble->bse', p, loc_t)                       # (B, S, E)
    h = jax.nn.relu(ws @ w1.T + b1)                                 # (B, S, H)
    o = h @ w2.T + b2                                               # (B, S, 1)
    return o[..., 0]


if __name__ == "__main__":
    B, S, L = 2, 8, 16
    E = 128       # fixed by nn.Linear(128, hidden_size)
    H = 10        # hidden_size default

    key = jax.random.PRNGKey(0)
    k_logp, k_loc, k_w1, k_b1, k_w2, k_b2 = jax.random.split(key, 6)

    log_probabilities = jax.random.normal(k_logp, (B, S, L), dtype=jnp.float32)
    location_embedding = jax.random.normal(k_loc, (B, E, L), dtype=jnp.float32)

    # PyTorch-Linear-style uniform init, deterministic.
    bound1 = 1.0 / jnp.sqrt(E)
    w1 = jax.random.uniform(k_w1, (H, E), jnp.float32, -bound1, bound1)
    b1 = jax.random.uniform(k_b1, (H,), jnp.float32, -bound1, bound1)
    bound2 = 1.0 / jnp.sqrt(H)
    w2 = jax.random.uniform(k_w2, (1, H), jnp.float32, -bound2, bound2)
    b2 = jax.random.uniform(k_b2, (1,), jnp.float32, -bound2, bound2)

    critic_forward = make_critic_forward(w1, b1, w2, b2)

    out = critic_forward(log_probabilities, location_embedding)
    out = jax.block_until_ready(out)

    ref = reference_forward(log_probabilities, location_embedding,
                            w1, b1, w2, b2)
    assert out.shape == (B, S)
    assert jnp.allclose(out, ref, atol=1e-5, rtol=1e-5), (out, ref)

    print("KERNEL_OK")
</pallas_src>

<mosaic_0001>
module attributes {stable_mosaic.version = 11 : i64} {
  func.func @critic_kernel(%arg0: memref<2x8x16xf32, #tpu.memory_space<vmem>>, %arg1: memref<2x128x16xf32, #tpu.memory_space<vmem>>, %arg2: memref<131x10xf32, #tpu.memory_space<vmem>>, %arg3: memref<2x8xf32, #tpu.memory_space<vmem>>) attributes {dimension_semantics = [], scalar_prefetch = 0 : i64, scratch_operands = 0 : i64, tpu.core_type = #tpu.core_type<tc>} {
    %c0 = arith.constant 0 : index
    %c0_0 = arith.constant 0 : index
    %c0_1 = arith.constant 0 : index
    %0 = vector.load %arg0[%c0, %c0_0, %c0_1] : memref<2x8x16xf32, #tpu.memory_space<vmem>>, vector<2x8x16xf32>
    %c0_2 = arith.constant 0 : index
    %c0_3 = arith.constant 0 : index
    %c0_4 = arith.constant 0 : index
    %1 = vector.load %arg1[%c0_2, %c0_3, %c0_4] : memref<2x128x16xf32, #tpu.memory_space<vmem>>, vector<2x128x16xf32>
    %cst = arith.constant dense<0xFF800000> : vector<2x8xf32>
    %2 = vector.multi_reduction <maximumf>, %0, %cst [2] : vector<2x8x16xf32> to vector<2x8xf32>
    %3 = vector.shape_cast %2 : vector<2x8xf32> to vector<2x8x1xf32>
    %4 = vector.broadcast %3 : vector<2x8x1xf32> to vector<2x8x16xf32>
    %5 = arith.subf %0, %4 : vector<2x8x16xf32>
    %6 = math.exp %5 : vector<2x8x16xf32>
    %cst_5 = arith.constant dense<0.000000e+00> : vector<2x8xf32>
    %7 = vector.multi_reduction <add>, %6, %cst_5 [2] : vector<2x8x16xf32> to vector<2x8xf32>
    %8 = vector.shape_cast %7 : vector<2x8xf32> to vector<2x8x1xf32>
    %9 = tpu.reciprocal %8 : vector<2x8x1xf32> -> vector<2x8x1xf32>
    %10 = vector.broadcast %9 : vector<2x8x1xf32> to vector<2x8x16xf32>
    %11 = arith.mulf %6, %10 : vector<2x8x16xf32>
    "tpu.trace_start"() <{level = 10 : i32, message = "bsl,bel->bse"}> : () -> ()
    %cst_6 = arith.constant dense<0.000000e+00> : vector<2x8x128xf32>
    %12 = tpu.matmul %11, %1, %cst_6 {dimension_numbers = #tpu.dot_dimension_numbers<[2], [2], [1], [1], [0, 0, 0, 1, 1, 1], [0], [0]>} : vector<2x8x16xf32>, vector<2x128x16xf32>, vector<2x8x128xf32> -> vector<2x8x128xf32>
    "tpu.trace_stop"() : () -> ()
    %13 = vector.shape_cast %12 : vector<2x8x128xf32> to vector<16x128xf32>
    %c0_7 = arith.constant 0 : index
    %c0_8 = arith.constant 0 : index
    %14 = vector.load %arg2[%c0_7, %c0_8] : memref<131x10xf32, #tpu.memory_space<vmem>>, vector<128x10xf32>
    %c128 = arith.constant 128 : index
    %c0_9 = arith.constant 0 : index
    %15 = vector.load %arg2[%c128, %c0_9] : memref<131x10xf32, #tpu.memory_space<vmem>>, vector<1x10xf32>
    %c129 = arith.constant 129 : index
    %c0_10 = arith.constant 0 : index
    %16 = vector.load %arg2[%c129, %c0_10] : memref<131x10xf32, #tpu.memory_space<vmem>>, vector<1x10xf32>
    %c130 = arith.constant 130 : index
    %c0_11 = arith.constant 0 : index
    %17 = vector.load %arg2[%c130, %c0_11] : memref<131x10xf32, #tpu.memory_space<vmem>>, vector<1x1xf32>
    %cst_12 = arith.constant dense<0.000000e+00> : vector<16x10xf32>
    %18 = tpu.matmul %13, %14, %cst_12 {dimension_numbers = #tpu.dot_dimension_numbers<[1], [0], [0], [1], [0, 0, 1, 1], [], []>} : vector<16x128xf32>, vector<128x10xf32>, vector<16x10xf32> -> vector<16x10xf32>
    %19 = vector.broadcast %15 : vector<1x10xf32> to vector<16x10xf32>
    %20 = arith.addf %18, %19 : vector<16x10xf32>
    %cst_13 = arith.constant 0.000000e+00 : f32
    %21 = vector.broadcast %cst_13 : f32 to vector<16x10xf32>
    %22 = arith.maximumf %20, %21 : vector<16x10xf32>
    %23 = vector.broadcast %16 : vector<1x10xf32> to vector<16x10xf32>
    %24 = arith.mulf %22, %23 : vector<16x10xf32>
    %25 = vector.shape_cast %24 : vector<16x10xf32> to vector<2x8x10xf32>
    %cst_14 = arith.constant dense<0.000000e+00> : vector<2x8xf32>
    %26 = vector.multi_reduction <add>, %25, %cst_14 [2] : vector<2x8x10xf32> to vector<2x8xf32>
    %27 = vector.broadcast %17 : vector<1x1xf32> to vector<2x8xf32>
    %28 = arith.addf %26, %27 : vector<2x8xf32>
    %c0_15 = arith.constant 0 : index
    %c0_16 = arith.constant 0 : index
    %29 = vector.load %arg3[%c0_15, %c0_16] : memref<2x8xf32, #tpu.memory_space<vmem>>, vector<2x8xf32>
    tpu.vector_store %arg3[%c0_15, %c0_16], %28 {strides = array<i32>} : memref<2x8xf32, #tpu.memory_space<vmem>>, vector<2x8xf32>,
    return
  }
}

</mosaic_0001>

<bundles_post_ra>
// kernel: forward.1
= control target key start
LH: loop header
LB: loop body
LE: loop exit
PB: predicated region body
PF: predicated region fallthrough
CT: control target
= control target key end

     0   :  { %vm49_vm0 = vcmask 130048   ;;  %s957_s0 = inlined_call_operand.vmem [shape: f32[2,8,16], index: 0, kind: input, shape index: {}]   ;;  %s958_s1 = inlined_call_operand.vmem [shape: f32[2,128,16], index: 1, kind: input, shape index: {}]   ;;  %s959_s2 = inlined_call_operand.vmem [shape: f32[131,10], index: 2, kind: input, shape index: {}]   ;;  %s960_s3 = inlined_call_operand.hbm [shape: f32[2,8], index: 3, kind: output, shape index: {}]  }
   0x1   :  { %v718_v0 = vld [vmem:[%s957_s0] sm:$0xff]  ;;  %v723_v1 = vld [vmem:[%s957_s0 + $0x8] sm:$0xff] }
   0x2   :  { %8 = vsyncpa [#allocation3], 0  ;;  %v50_v2 = vsel %vm49_vm0, %v718_v0, -inf  ;;  %v53_v3 = vsel %vm49_vm0, %v723_v1, -inf  ;;  %v32_v4 = vld [vmem:[%s958_s1 + $0x78] sm:$0xff]  ;;  %v692_v6 = vmov 0.0  }
   0x3   :  { %51 = vmax.xlane.f32.xlu0 %v50_v2  ;;  %v48_v5 = vld [vmem:[%s958_s1 + $0xf8] sm:$0xff]  ;;  %552 = vmatprep.subr.mxu0 %v692_v6  ;;  %v31_v7 = vld [vmem:[%s958_s1 + $0x70] sm:$0xff]  ;;  %v30_v9 = vld [vmem:[%s958_s1 + $0x68] sm:$0xff]  ;;  %vm693_vm1 = vmmov 0   ;;  %vm420_vm2 = vcmask 80896   ;;  %vm445_vm3 = vcmask 1041409  }
   0x4   :  { %587 = vmatprep.subr.mxu1 %v692_v6  ;;  %553 = vmatpush3.xpose.msk.msra.mxu0 %vm49_vm0, %v32_v4  ;;  %v47_v8 = vld [vmem:[%s958_s1 + $0xf0] sm:$0xff]  ;;  %v46_v10 = vld [vmem:[%s958_s1 + $0xe8] sm:$0xff]  ;;  %v29_v11 = vld [vmem:[%s958_s1 + $0x60] sm:$0xff]  ;;  %vm448_vm4 = vcmask 58368  }
   0x5   :  { %588 = vmatpush3.xpose.msk.msra.mxu1 %vm49_vm0, %v48_v5  ;;  %554 = vmatprep.subr.mxu0 %v692_v6  ;;  %v45_v12 = vld [vmem:[%s958_s1 + $0xe0] sm:$0xff]  ;;  %v28_v13 = vld [vmem:[%s958_s1 + $0x58] sm:$0xff]  ;;  %v27_v15 = vld [vmem:[%s958_s1 + $0x50] sm:$0xff] }
   0x6   :  { %589 = vmatprep.subr.mxu1 %v692_v6  ;;  %v44_v14 = vld [vmem:[%s958_s1 + $0xd8] sm:$0xff]  ;;  %v43_v16 = vld [vmem:[%s958_s1 + $0xd0] sm:$0xff]  ;;  %v26_v17 = vld [vmem:[%s958_s1 + $0x48] sm:$0xff]  ;;  %584 = vmatprep.mubr.msk.f32.mxu0 %vm693_vm1, %v692_v6 }
   0x7   :  { %54 = vmax.xlane.f32.xlu0 %v53_v3  ;;  %v42_v18 = vld [vmem:[%s958_s1 + $0xc8] sm:$0xff]  ;;  %v25_v19 = vld [vmem:[%s958_s1 + $0x40] sm:$0xff]  ;;  %v24_v21 = vld [vmem:[%s958_s1 + $0x38] sm:$0xff]  ;;  %619 = vmatprep.mubr.msk.f32.mxu1 %vm693_vm1, %v692_v6 }
   0x8   :  { %555 = vmatpush3.xpose.msk.msra.mxu0 %vm49_vm0, %v31_v7  ;;  %v41_v20 = vld [vmem:[%s958_s1 + $0xc0] sm:$0xff]  ;;  %v40_v22 = vld [vmem:[%s958_s1 + $0xb8] sm:$0xff]  ;;  %v23_v23 = vld [vmem:[%s958_s1 + $0x30] sm:$0xff] }
   0x9   :  { %590 = vmatpush3.xpose.msk.msra.mxu1 %vm49_vm0, %v47_v8  ;;  %556 = vmatprep.subr.mxu0 %v692_v6  ;;  %v39_v24 = vld [vmem:[%s958_s1 + $0xb0] sm:$0xff]  ;;  %v22_v25 = vld [vmem:[%s958_s1 + $0x28] sm:$0xff]  ;;  %v21_v27 = vld [vmem:[%s958_s1 + $0x20] sm:$0xff] }
   0xa   :  { %591 = vmatprep.subr.mxu1 %v692_v6  ;;  %v38_v26 = vld [vmem:[%s958_s1 + $0xa8] sm:$0xff]  ;;  %v20_v38 = vld [vmem:[%s958_s1 + $0x18] sm:$0xff]  ;;  %v37_v39 = vld [vmem:[%s958_s1 + $0xa0] sm:$0xff] }
   0xb   :  { %v19_v40 = vld [vmem:[%s958_s1 + $0x10] sm:$0xff]  ;;  %v36_v41 = vld [vmem:[%s958_s1 + $0x98] sm:$0xff]  ;;  %v18_v42 = vld [vmem:[%s958_s1 + $0x8] sm:$0xff] }
   0xc   :  { %557 = vmatpush3.xpose.msk.msra.mxu0 %vm49_vm0, %v30_v9  ;;  %v35_v43 = vld [vmem:[%s958_s1 + $0x90] sm:$0xff]  ;;  %v17_v44 = vld [vmem:[%s958_s1] sm:$0xff]  ;;  %v34_v45 = vld [vmem:[%s958_s1 + $0x88] sm:$0xff] }
   0xd   :  { %592 = vmatpush3.xpose.msk.msra.mxu1 %vm49_vm0, %v46_v10  ;;  %558 = vmatprep.subr.mxu0 %v692_v6  ;;  %v33_v46 = vld [vmem:[%s958_s1 + $0x80] sm:$0xff]  ;;  %v329_v47 = vld [vmem:[%s959_s2 + $0x78] sm:$0xff]  ;;  %v328_v52 = vld [vmem:[%s959_s2 + $0x70] sm:$0xff] }
   0xe   :  { %593 = vmatprep.subr.mxu1 %v692_v6  ;;  %v327_v54 = vld [vmem:[%s959_s2 + $0x68] sm:$0xff]  ;;  %v326_v56 = vld [vmem:[%s959_s2 + $0x60] sm:$0xff]  ;;  %v325_v57 = vld [vmem:[%s959_s2 + $0x58] sm:$0xff] }
   0xf   :  { %v324_v58 = vld [vmem:[%s959_s2 + $0x50] sm:$0xff]  ;;  %v323_v59 = vld [vmem:[%s959_s2 + $0x48] sm:$0xff]  ;;  %v322_v60 = vld [vmem:[%s959_s2 + $0x40] sm:$0xff] }
  0x10   :  { %559 = vmatpush3.xpose.msk.msra.mxu0 %vm49_vm0, %v29_v11  ;;  %v321_v61 = vld [vmem:[%s959_s2 + $0x38] sm:$0xff]  ;;  %v320_v62 = vld [vmem:[%s959_s2 + $0x30] sm:$0xff]  ;;  %v319_v63 = vld [vmem:[%s959_s2 + $0x28] sm:$0xff] }
  0x11   :  { %594 = vmatpush3.xpose.msk.msra.mxu1 %vm49_vm0, %v45_v12  ;;  %560 = vmatprep.subr.mxu0 %v692_v6  ;;  %v316_v2 = vld [vmem:[%s959_s2 + $0x10] sm:$0xff]  ;;  %v315_v3 = vld [vmem:[%s959_s2 + $0x8] sm:$0xff]  ;;  %v314_v4 = vld [vmem:[%s959_s2] sm:$0xff] }
  0x12   :  { %595 = vmatprep.subr.mxu1 %v692_v6  ;;  %v332_v9 = vld [vmem:[%s959_s2 + $0x82] sm:$0x1]  ;;  %v498_v10 = vld [vmem:[%s959_s2 + $0x80] ss:$0 sm:$0xff] }
  0x13   :  { %657 = vpush %v332_v9 }
  0x14   :  { %561 = vmatpush3.xpose.msk.msra.mxu0 %vm49_vm0, %v28_v13 }
  0x15   :  { %596 = vmatpush3.xpose.msk.msra.mxu1 %vm49_vm0, %v44_v14  ;;  %562 = vmatprep.subr.mxu0 %v692_v6  ;;  %v499_v14 = vld [vmem:[%s959_s2 + $0x81] ss:$0 sm:$0xff] }
  0x16   :  { %597 = vmatprep.subr.mxu1 %v692_v6 }
  0x18   :  { %563 = vmatpush3.xpose.msk.msra.mxu0 %vm49_vm0, %v27_v15 }
  0x19   :  { %598 = vmatpush3.xpose.msk.msra.mxu1 %vm49_vm0, %v43_v16  ;;  %564 = vmatprep.subr.mxu0 %v692_v6 }
  0x1a   :  { %599 = vmatprep.subr.mxu1 %v692_v6 }
  0x1c   :  { %565 = vmatpush3.xpose.msk.msra.mxu0 %vm49_vm0, %v26_v17 }
  0x1d   :  { %600 = vmatpush3.xpose.msk.msra.mxu1 %vm49_vm0, %v42_v18  ;;  %566 = vmatprep.subr.mxu0 %v692_v6 }
  0x1e   :  { %601 = vmatprep.subr.mxu1 %v692_v6 }
  0x20   :  { %567 = vmatpush3.xpose.msk.msra.mxu0 %vm49_vm0, %v25_v19 }
  0x21   :  { %602 = vmatpush3.xpose.msk.msra.mxu1 %vm49_vm0, %v41_v20  ;;  %568 = vmatprep.subr.mxu0 %v692_v6 }
  0x22   :  { %603 = vmatprep.subr.mxu1 %v692_v6 }
  0x24   :  { %569 = vmatpush3.xpose.msk.msra.mxu0 %vm49_vm0, %v24_v21 }
  0x25   :  { %604 = vmatpush3.xpose.msk.msra.mxu1 %vm49_vm0, %v40_v22  ;;  %570 = vmatprep.subr.mxu0 %v692_v6  ;;  %v435_v22 = vlaneseq }
  0x26   :  { %605 = vmatprep.subr.mxu1 %v692_v6 }
  0x28   :  { %571 = vmatpush3.xpose.msk.msra.mxu0 %vm49_vm0, %v23_v23  ;;  %v436_v23 = vand.u32 127, %v435_v22 }
  0x29   :  { %606 = vmatpush3.xpose.msk.msra.mxu1 %vm49_vm0, %v39_v24  ;;  %572 = vmatprep.subr.mxu0 %v692_v6  ;;  %v438_v24 = vshrl.u32 %v435_v22, 7 }
  0x2a   :  { %607 = vmatprep.subr.mxu1 %v692_v6 }
  0x2c   :  { %573 = vmatpush3.xpose.msk.msra.mxu0 %vm49_vm0, %v22_v25 }
  0x2d   :  { %608 = vmatpush3.xpose.msk.msra.mxu1 %vm49_vm0, %v38_v26  ;;  %574 = vmatprep.subr.mxu0 %v692_v6 }
  0x2e   :  { %609 = vmatprep.subr.mxu1 %v692_v6 }
  0x30   :  { %575 = vmatpush3.xpose.msk.msra.mxu0 %vm49_vm0, %v21_v27  ;;  %v439_v27 = vsub.s32 %v436_v23, %v438_v24 }
  0x31   :  { %576 = vmatprep.subr.mxu0 %v692_v6  ;;  %610 = vmatpush3.xpose.msk.msra.mxu1 %vm49_vm0, %v37_v39 }
  0x32   :  { %611 = vmatprep.subr.mxu1 %v692_v6 }
  0x34   :  { %577 = vmatpush3.xpose.msk.msra.mxu0 %vm49_vm0, %v20_v38 }
  0x35   :  { %578 = vmatprep.subr.mxu0 %v692_v6  ;;  %612 = vmatpush3.xpose.msk.msra.mxu1 %vm49_vm0, %v36_v41 }
  0x36   :  { %613 = vmatprep.subr.mxu1 %v692_v6 }
  0x38   :  { %579 = vmatpush3.xpose.msk.msra.mxu0 %vm49_vm0, %v19_v40 }
  0x39   :  { %580 = vmatprep.subr.mxu0 %v692_v6  ;;  %614 = vmatpush3.xpose.msk.msra.mxu1 %vm49_vm0, %v35_v43 }
  0x3a   :  { %615 = vmatprep.subr.mxu1 %v692_v6 }
  0x3c   :  { %581 = vmatpush3.xpose.msk.msra.mxu0 %vm49_vm0, %v18_v42 }
  0x3d   :  { %582 = vmatprep.subr.mxu0 %v692_v6  ;;  %616 = vmatpush3.xpose.msk.msra.mxu1 %vm49_vm0, %v34_v45 }
  0x3e   :  { %617 = vmatprep.subr.mxu1 %v692_v6 }
  0x40   :  { %583 = vmatpush3.xpose.msk.msra.mxu0 %vm49_vm0, %v17_v44 }
  0x41   :  { %618 = vmatpush3.xpose.msk.msra.mxu1 %vm49_vm0, %v33_v46  ;;  %622 = vmatprep.subr.mxu0 %v329_v47 }
  0x44   :  { %s658_s4 = spop %657 }
  0x45   :  { %v429_v25 = vstv %s658_s4 }
  0x8c   :  { %v52_v28 = vpop.xlane.xlu0 %51 }
  0x8d   :  { %v56_v29 = vsub.f32 %v718_v0, %v52_v28  ;;  %v318_v0 = vld [vmem:[%s959_s2 + $0x20] sm:$0xff] }
  0x8f   :  { %v58_v30 = vmul.f32 1.442695, %v56_v29 }
  0x90   :  { %v55_v31 = vpop.xlane.xlu0 %54 }
  0x91   :  { %662 = vpow2.f32 %v58_v30  ;;  %v57_v32 = vsub.f32 %v723_v1, %v55_v31  ;;  %v317_v1 = vld [vmem:[%s959_s2 + $0x18] sm:$0xff]  ;;  %s694_s2 = smov [#allocation2]  }
  0x92   :  { %s456_s5 = sshll.u32 %s694_s2, 4  ;;  %s457_s5 = int_to_ptr.vmem [resolvable:$true] %s456_s5 }
  0x93   :  { %v60_v33 = vmul.f32 1.442695, %v57_v32  ;;  %s670_s6 = scalar_lea.vmem %s457_s5, 32  ;;  %p675_p1 = scmp.lt.s32.totalorder %s457_s5, %s457_s5 }
  0x94   :  { %p671_p0 = scmp.ne.s32.totalorder %s457_s5, %s670_s6  ;;  %p676_p2 = scmp.lt.s32.totalorder %s670_s6, %s670_s6 }
  0x95   :  { %664 = vpow2.f32 %v60_v33 }
  0x96   :  { %p677_p3 = por %p676_p2, %p675_p1 }
  0x98   :  { %p678_p4 = pnand %p677_p3, %p671_p0 }
  0x9e   :  { %v663_v34 = vpop.eup %662 }
  0x9f   :  { %v62_v35 = vsel %vm49_vm0, %v663_v34, 0.0 }
  0xa0   :  { %63 = vadd.xlane.f32.xlu1 %v62_v35 }
  0xa2   :  { %v665_v36 = vpop.eup %664 }
  0xa3   :  { %v65_v37 = vsel %vm49_vm0, %v665_v36, 0.0 }
  0xa4   :  { %66 = vadd.xlane.f32.xlu1 %v65_v37 }
 0x129   :  { %v64_v48 = vpop.xlane.xlu1 %63 }
 0x12a   :  { %666 = vrcp.f32 %v64_v48 }
 0x12d   :  { %v67_v49 = vpop.xlane.xlu1 %66 }
 0x12e   :  { %668 = vrcp.f32 %v67_v49 }
 0x137   :  { %v667_v50 = vpop.eup %666 }
 0x138   :  { %v70_v51 = vmul.f32 %v667_v50, %v663_v34 }
 0x13a   :  { %585 = vmatmul.mubr.msk.f32.vlgmr.msra.gmra.mxu0 %vm49_vm0, %v70_v51 }
 0x13b   :  { %v669_v53 = vpop.eup %668  ;;  %623 = vmatpush3.msra.mxu0 %v329_v47 }
 0x13c   :  { %v71_v55 = vmul.f32 %v669_v53, %v665_v36  ;;  %624 = vmatprep.subr.mxu0 %v328_v52 }
 0x13d   :  { %625 = vmatpush3.msra.mxu0 %v328_v52 }
 0x13e   :  { %620 = vmatmul.mubr.msk.f32.vlgmr.msra.gmra.mxu1 %vm49_vm0, %v71_v55  ;;  %626 = vmatprep.subr.mxu0 %v327_v54 }
 0x13f   :  { %627 = vmatpush3.msra.mxu0 %v327_v54 }
 0x140   :  { %628 = vmatprep.subr.mxu0 %v326_v56 }
 0x141   :  { %629 = vmatpush3.msra.mxu0 %v326_v56 }
 0x142   :  { %630 = vmatprep.subr.mxu0 %v325_v57 }
 0x143   :  { %631 = vmatpush3.msra.mxu0 %v325_v57 }
 0x144   :  { %632 = vmatprep.subr.mxu0 %v324_v58 }
 0x145   :  { %633 = vmatpush3.msra.mxu0 %v324_v58 }
 0x146   :  { %634 = vmatprep.subr.mxu0 %v323_v59 }
 0x147   :  { %635 = vmatpush3.msra.mxu0 %v323_v59 }
 0x148   :  { %636 = vmatprep.subr.mxu0 %v322_v60 }
 0x149   :  { %637 = vmatpush3.msra.mxu0 %v322_v60 }
 0x14a   :  { %638 = vmatprep.subr.mxu0 %v321_v61 }
 0x14b   :  { %639 = vmatpush3.msra.mxu0 %v321_v61 }
 0x14c   :  { %640 = vmatprep.subr.mxu0 %v320_v62 }
 0x14d   :  { %641 = vmatpush3.msra.mxu0 %v320_v62 }
 0x14e   :  { %642 = vmatprep.subr.mxu0 %v319_v63 }
 0x14f   :  { %643 = vmatpush3.msra.mxu0 %v319_v63 }
 0x150   :  { %644 = vmatprep.subr.mxu0 %v318_v0 }
 0x151   :  { %645 = vmatpush3.msra.mxu0 %v318_v0 }
 0x152   :  { %646 = vmatprep.subr.mxu0 %v317_v1 }
 0x153   :  { %647 = vmatpush3.msra.mxu0 %v317_v1 }
 0x154   :  { %648 = vmatprep.subr.mxu0 %v316_v2 }
 0x155   :  { %649 = vmatpush3.msra.mxu0 %v316_v2 }
 0x156   :  { %650 = vmatprep.subr.mxu0 %v315_v3 }
 0x157   :  { %651 = vmatpush3.msra.mxu0 %v315_v3 }
 0x158   :  { %652 = vmatprep.subr.mxu0 %v314_v4 }
 0x159   :  { %653 = vmatpush3.msra.mxu0 %v314_v4 }
 0x1fa   :  { %v189_v5 = vpop.f32.mrf.mxu0 }
 0x1fb   :  { %654 = vmatprep.mubr.f32.mxu0 %v189_v5 }
 0x1fc   :  { %v586_v6 = vpop.f32.mrf.mxu0 }
 0x1fe   :  { %v310_v7 = vpop.f32.mrf.mxu1 }
 0x1ff   :  { %655 = vmatmul.mubr.f32.vlgmr.msra.gmra.mxu0 %v310_v7 }
 0x200   :  { %v621_v8 = vpop.f32.mrf.mxu1 }
 0x2bf   :  { %v656_v11 = vpop.f32.mrf.mxu0 }
 0x2c0   :  { %v409_v12 = vadd.f32 %v656_v11, %v498_v10 }
 0x2c1   :  { %v403_v13 = vpop.f32.mrf.mxu0 }
 0x2c2   :  { %v413_v15 = vmax.f32 %v409_v12, 0.0  ;;  %v404_v16 = vadd.f32 %v498_v10, %v403_v13 }
 0x2c4   :  { %v412_v17 = vmax.f32 %v404_v16, 0.0  ;;  %v419_v18 = vmul.f32 %v499_v14, %v413_v15 }
 0x2c6   :  { %v424_v19 = vsel %vm420_vm2, %v419_v18, 0.0  ;;  %v418_v20 = vmul.f32 %v499_v14, %v412_v17 }
 0x2c7   :  { %425 = vadd.xlane.f32.xlu1 %v424_v19 }
 0x2c8   :  { %v421_v21 = vsel %vm420_vm2, %v418_v20, 0.0 }
 0x2c9   :  { %422 = vadd.xlane.f32.xlu0 %v421_v21 }
 0x350   :  { %v426_v26 = vpop.xlane.xlu1 %425 }
 0x351   :  { %v432_v28 = vadd.f32 %v429_v25, %v426_v26 }
 0x352   :  { %v423_v29 = vpop.xlane.xlu0 %422 }
 0x353   :  { %v431_v30 = vadd.f32 %v429_v25, %v423_v29  ;;  %v444_v31 = vrot.slane %v432_v28, %v439_v27 }
 0x355   :  { %v440_v32 = vrot.slane %v431_v30, %v439_v27 }
 0x357   :  { %v446_v33 = vsel %vm445_vm3, %v444_v31, %v440_v32 }
 0x358   :  { %449 = vst.msk [vmem:[#allocation2] sm:$0x3] %vm448_vm4, %v446_v33 }
 0x359   :  { %681 = shalt.err (!%p678_p4)
}
 0x35a   :  { %459 = dma.vmem_to_hbm [thread:$0]  %s457_s5, 32, %s960_s3, [#allocation3]  }
 0x35b   :  { %690 = dma.done.wait [#allocation3], 32  }
 0x35c   :  { %691 = vsyncadd [#allocation3], 4294967264 }
 0x35d   :  { %463 = vsyncpa [#allocation3], 1 }

</bundles_post_ra>
